<compile_context>
chip_gen: v5e
topology: v5e:2x2
jax: 0.10.0
libtpu: 0.0.40
codegen_flags: <defaults>
</compile_context>

<pallas_src>
import functools

import jax
import jax.numpy as jnp
from jax.experimental import pallas as pl
from jax.experimental.pallas import tpu as pltpu


def _round_up(x: int, m: int) -> int:
    return ((x + m - 1) // m) * m


def _tpu_vmem_and_mxu():
    """Best-effort (setup-time) query of VMEM capacity and whether the MXU is 128-wide."""
    kind = ""
    try:
        kind = jax.devices()[0].device_kind.lower()
    except Exception:
        pass
    vmem = None
    try:
        vmem = int(pltpu.get_tpu_info().vmem_capacity_bytes)
    except Exception:
        vmem = None
    if vmem is None:
        vmem = (64 << 20) if "v7" in kind else (128 << 20)
    narrow_mxu = any(t in kind for t in ("v2", "v3", "v4", "v5e", "v5 lite", "v5lite"))
    return vmem, narrow_mxu


def _vmem_estimate(tm, tI, H, xbytes, wbytes, obytes,
                   has_residual, normalize, single_buffer_io):
    """Working-set estimate: double-buffered streams + scratches + kernel f32 temporaries."""
    io_mult = 1 if single_buffer_io else 2
    est = 2 * tm * H * xbytes                        # x rows (double-buffered)
    if normalize:
        est += 2 * H * 4                             # norm weights
    est += 2 * H * (2 * tI) * wbytes                 # gate|up tile (double-buffered)
    est += 2 * tI * H * wbytes                       # down tile (double-buffered)
    if has_residual:
        est += io_mult * tm * H * xbytes             # residual rows
    est += io_mult * tm * H * obytes                 # output rows
    est += tm * H * wbytes                           # cached normalized activations (scratch)
    est += tm * H * 4                                # f32 accumulator (scratch)
    est += tm * H * 4 + 3 * tm * tI * 4 + tm * tI * wbytes   # in-kernel f32 temporaries
    return est


def _mlp_kernel(*refs, normalize: bool, has_residual: bool, eps: float, tI: int):
    it = iter(refs)
    x_ref = next(it)                                  # (tm, H) activations
    nw_ref = next(it) if normalize else None          # (1, H) norm weights (native dtype)
    gu_ref = next(it)                                 # (H, 2*tI)  [gate tile | up tile]
    dw_ref = next(it)                                 # (tI, H)    down tile
    res_ref = next(it) if has_residual else None      # (tm, H)
    o_ref = next(it)                                  # (tm, H)
    xn_ref = next(it)                                 # (tm, H) weight-dtype scratch (normed x)
    acc_ref = next(it)                                # (tm, H) f32 accumulator scratch

    l = pl.program_id(1)

    # RMSNorm computed once per row tile (hoisted out of the I loop) into VMEM scratch.
    @pl.when(l == 0)
    def _():
        x = x_ref[...].astype(jnp.float32)
        if normalize:
            var = jnp.mean(x * x, axis=-1, keepdims=True)
            x = x * jax.lax.rsqrt(var + eps)
            x = x * nw_ref[...].astype(jnp.float32)
        xn_ref[...] = x.astype(xn_ref.dtype)
        acc_ref[...] = jnp.zeros_like(acc_ref)

    xn = xn_ref[...]                                  # native MXU dtype
    # Two dots on static ref halves: no (tm, 2*tI) f32 intermediate, no slice copies.
    g = jnp.dot(xn, gu_ref[:, :tI], preferred_element_type=jnp.float32)
    u = jnp.dot(xn, gu_ref[:, tI:], preferred_element_type=jnp.float32)
    h = (g * jax.nn.sigmoid(g)) * u                   # SiLU(g) * u, f32 (tm, tI)

    # Down-projection partial sum into the resident f32 accumulator.
    acc_ref[...] += jnp.dot(h.astype(dw_ref.dtype), dw_ref[...],
                            preferred_element_type=jnp.float32)

    @pl.when(l == pl.num_programs(1) - 1)
    def _():
        y = acc_ref[...]
        if has_residual:
            y = y + res_ref[...].astype(jnp.float32)
        o_ref[...] = y.astype(o_ref.dtype)


class MuiGateUpDownMLPPallas:
    """Setup-time weight preparation + per-forward fused Pallas kernel.

    gate_w_t / up_w_t: (H, I), down_w_t: (I, H) — i.e. nn.Linear weights transposed once
    at module-replacement time (mirrors MuiGateUpDownMLP.replace()).
    """

    def __init__(self, gate_w_t, up_w_t, down_w_t, norm_weights=None,
                 variance_epsilon: float = 1e-6, tI: int = None, tm_max: int = None):
        H, I = gate_w_t.shape
        self.H, self.I = H, I
        self.normalize = norm_weights is not None
        self.eps = float(variance_epsilon)
        # Keep norm weights in their native dtype (promoted to f32 inside the kernel).
        self.norm_weights = (None if norm_weights is None
                             else jnp.asarray(norm_weights).reshape(1, H))
        self.wdtype = gate_w_t.dtype
        self.wbytes = jnp.dtype(self.wdtype).itemsize

        vmem_cap, narrow_mxu = _tpu_vmem_and_mxu()
        self.vmem_capacity = vmem_cap
        self.vmem_budget = int(0.70 * vmem_cap)

        # Row-tile upper bound: v6e/v7x MXUs are 256-wide; keep 128-row f32 tiles only on
        # narrow-MXU generations (v5e and older).
        if tm_max is None:
            if self.wbytes <= 2:
                tm_max = 256 if narrow_mxu else 512
            else:
                tm_max = 128 if narrow_mxu else 256
        self.tm_max = tm_max

        # Budget-driven intermediate tile size (fixes the weight layout, so done at setup).
        if tI is None:
            i_cap = _round_up(I, 128)
            tI = 128
            for cand in (1024, 512, 256, 128):
                c = min(cand, i_cap)
                if _vmem_estimate(tm_max, c, H, 4, self.wbytes, 4,
                                  True, self.normalize, False) <= self.vmem_budget:
                    tI = c
                    break
        tI = min(tI, _round_up(I, 128))
        self.tI = tI

        # --- setup-time weight prep (done ONCE, cached on the instance) ---
        I_pad = _round_up(I, tI)
        nI = I_pad // tI
        self.I_pad, self.nI = I_pad, nI
        gw, uw, dw = gate_w_t, up_w_t, down_w_t
        if I_pad != I:
            gw = jnp.pad(gw, ((0, 0), (0, I_pad - I)))
            uw = jnp.pad(uw, ((0, 0), (0, I_pad - I)))
            dw = jnp.pad(dw, ((0, I_pad - I), (0, 0)))
        # Block-interleave gate/up per I-tile and lay out each tile as a contiguous slab:
        #   gu_w[l] = [gate cols l*tI:(l+1)*tI | up cols l*tI:(l+1)*tI]  -> (nI, H, 2*tI)
        gu = jnp.concatenate([gw.reshape(H, nI, tI), uw.reshape(H, nI, tI)], axis=2)
        self.gu_w = jax.block_until_ready(jnp.transpose(gu, (1, 0, 2)))
        self.down_w = jax.block_until_ready(dw.reshape(nI, tI, H))   # (nI, tI, H)

    def __call__(self, x, residual=None):
        orig_shape = x.shape
        H = self.H
        x2 = x.reshape(-1, H)
        M = x2.shape[0]
        xbytes = jnp.dtype(x.dtype).itemsize
        has_residual = residual is not None
        tI, nI = self.tI, self.nI

        # Row tile: biggest MXU-shaped tile that fits M and the VMEM budget.
        tm = min(self.tm_max, _round_up(M, 8))
        while tm > 8 and _vmem_estimate(tm, tI, H, xbytes, self.wbytes, xbytes,
                                        has_residual, self.normalize,
                                        False) > self.vmem_budget:
            tm //= 2
        tm = max(8, tm)

        # If still tight, drop residual/output to single-buffered DMA (hidden by the I loop).
        single_buffer_io = _vmem_estimate(tm, tI, H, xbytes, self.wbytes, xbytes,
                                          has_residual, self.normalize,
                                          False) > self.vmem_budget

        M_pad = _round_up(M, tm)
        n_m = M_pad // tm
        if M_pad != M:
            x2 = jnp.pad(x2, ((0, M_pad - M), (0, 0)))
        res2 = None
        if has_residual:
            res2 = residual.reshape(-1, H)
            if M_pad != M:
                res2 = jnp.pad(res2, ((0, M_pad - M), (0, 0)))

        inputs = [x2]
        in_specs = [pl.BlockSpec((tm, H), lambda i, l: (i, 0))]
        if self.normalize:
            inputs.append(self.norm_weights)
            in_specs.append(pl.BlockSpec((1, H), lambda i, l: (0, 0)))
        inputs += [self.gu_w, self.down_w]
        in_specs += [
            pl.BlockSpec((None, H, 2 * tI), lambda i, l: (l, 0, 0)),   # contiguous gu slab
            pl.BlockSpec((None, tI, H), lambda i, l: (l, 0, 0)),       # contiguous down slab
        ]
        io_kw = dict(pipeline_mode=pl.Buffered(1)) if single_buffer_io else {}
        if has_residual:
            inputs.append(res2)
            in_specs.append(pl.BlockSpec((tm, H), lambda i, l: (i, 0), **io_kw))
        out_spec = pl.BlockSpec((tm, H), lambda i, l: (i, 0), **io_kw)

        kernel = functools.partial(_mlp_kernel, normalize=self.normalize,
                                   has_residual=has_residual, eps=self.eps, tI=tI)

        vmem_needed = _vmem_estimate(tm, tI, H, xbytes, self.wbytes, xbytes,
                                     has_residual, self.normalize, single_buffer_io)
        # Per-generation cap (leave headroom for XLA): ~112 MiB on v5e/v6e, ~48 MiB on v7x.
        cap = max(self.vmem_capacity - (16 << 20), 32 << 20)
        vmem_limit = int(min(max(vmem_needed + (12 << 20), 32 << 20), cap))

        cost = pl.CostEstimate(
            flops=6 * M * H * self.I,
            transcendentals=M * self.I,
            bytes_accessed=(M * H * xbytes * (2 + (1 if has_residual else 0))
                            + 3 * H * self.I_pad * self.wbytes * n_m),
        )

        out = pl.pallas_call(
            kernel,
            out_shape=jax.ShapeDtypeStruct((M_pad, H), x.dtype),
            grid_spec=pltpu.PrefetchScalarGridSpec(
                num_scalar_prefetch=0,
                grid=(n_m, nI),
                in_specs=in_specs,
                out_specs=out_spec,
                scratch_shapes=[pltpu.VMEM((tm, H), self.wdtype),     # cached (normed) x
                                pltpu.VMEM((tm, H), jnp.float32)],    # f32 accumulator
            ),
            compiler_params=pltpu.CompilerParams(
                dimension_semantics=("parallel", "arbitrary"),
                vmem_limit_bytes=vmem_limit),
            cost_estimate=cost,
        )(*inputs)

        if M_pad != M:
            out = out[:M]
        return out.reshape(orig_shape)


def _reference(x, gate_w_t, up_w_t, down_w_t, norm_weights, eps, residual):
    xf = x.astype(jnp.float32)
    if norm_weights is not None:
        var = jnp.mean(xf * xf, axis=-1, keepdims=True)
        xf = xf * jax.lax.rsqrt(var + eps) * norm_weights.astype(jnp.float32)
    g = xf @ gate_w_t.astype(jnp.float32)
    u = xf @ up_w_t.astype(jnp.float32)
    y = (g * jax.nn.sigmoid(g) * u) @ down_w_t.astype(jnp.float32)
    if residual is not None:
        y = y + residual.astype(jnp.float32)
    return y.astype(x.dtype)


if __name__ == "__main__":
    key = jax.random.PRNGKey(0)
    dtype = jnp.float32
    eps = 1e-6

    # --- case 1: normalize + residual, 2-step I accumulation (tI=128) ---
    B, T, H, I = 2, 8, 128, 256
    k_x, k_g, k_u, k_d, k_n, k_r, key = jax.random.split(key, 7)
    x = jax.random.normal(k_x, (B, T, H), dtype)
    residual = jax.random.normal(k_r, (B, T, H), dtype)
    gate_w_t = jax.random.normal(k_g, (H, I), dtype) * 0.02
    up_w_t = jax.random.normal(k_u, (H, I), dtype) * 0.02
    down_w_t = jax.random.normal(k_d, (I, H), dtype) * 0.02
    norm_weights = jnp.ones((H,), dtype) + 0.1 * jax.random.normal(k_n, (H,), dtype)

    mlp1 = MuiGateUpDownMLPPallas(gate_w_t, up_w_t, down_w_t,
                                  norm_weights=norm_weights,
                                  variance_epsilon=eps, tI=128)
    out1 = jax.block_until_ready(mlp1(x, residual=residual))
    ref1 = _reference(x, gate_w_t, up_w_t, down_w_t, norm_weights, eps, residual)
    assert out1.shape == (B, T, H)
    assert jnp.allclose(out1, ref1, atol=1e-3, rtol=1e-3), "case1 mismatch"

    # --- case 2: no norm, no residual, padded M (5->8) and padded I (384->512, tI=256) ---
    B2, T2, H2, I2 = 1, 5, 128, 384
    k_x2, k_g2, k_u2, k_d2, key = jax.random.split(key, 5)
    x2 = jax.random.normal(k_x2, (B2, T2, H2), dtype)
    gate2 = jax.random.normal(k_g2, (H2, I2), dtype) * 0.02
    up2 = jax.random.normal(k_u2, (H2, I2), dtype) * 0.02
    down2 = jax.random.normal(k_d2, (I2, H2), dtype) * 0.02

    mlp2 = MuiGateUpDownMLPPallas(gate2, up2, down2, tI=256)
    out2 = jax.block_until_ready(mlp2(x2))
    ref2 = _reference(x2, gate2, up2, down2, None, 0.0, None)
    assert out2.shape == (B2, T2, H2)
    assert jnp.allclose(out2, ref2, atol=1e-3, rtol=1e-3), "case2 mismatch"

    # --- case 3: decode-sized (M=1), normalize, auto-chosen tI, single I tile ---
    x3 = jax.random.normal(jax.random.fold_in(key, 3), (1, 1, H), dtype)
    mlp3 = MuiGateUpDownMLPPallas(gate_w_t, up_w_t, down_w_t,
                                  norm_weights=norm_weights, variance_epsilon=eps)
    out3 = jax.block_until_ready(mlp3(x3))
    ref3 = _reference(x3, gate_w_t, up_w_t, down_w_t, norm_weights, eps, None)
    assert out3.shape == (1, 1, H)
    assert jnp.allclose(out3, ref3, atol=1e-3, rtol=1e-3), "case3 mismatch"

    print("KERNEL_OK")
</pallas_src>

<mosaic_0001>
module attributes {stable_mosaic.version = 11 : i64} {
  func.func @_mlp_kernel(%arg0: i32, %arg1: i32, %arg2: memref<16x128xf32, #tpu.memory_space<vmem>>, %arg3: memref<1x128xf32, #tpu.memory_space<vmem>>, %arg4: memref<1x128x256xf32, #tpu.memory_space<vmem>>, %arg5: memref<1x128x128xf32, #tpu.memory_space<vmem>>, %arg6: memref<16x128xf32, #tpu.memory_space<vmem>>, %arg7: memref<16x128xf32, #tpu.memory_space<vmem>>, %arg8: memref<16x128xf32, #tpu.memory_space<vmem>>, %arg9: memref<16x128xf32, #tpu.memory_space<vmem>>) attributes {dimension_semantics = [#tpu.dimension_semantics<parallel>, #tpu.dimension_semantics<arbitrary>], iteration_bounds = array<i64: 1, 2>, scalar_prefetch = 0 : i64, scratch_operands = 2 : i64, tpu.core_type = #tpu.core_type<tc>, window_params = [{transform_indices = @transform_0, window_bounds = array<i64: 16, 128>}, {pipeline_mode = #tpu.pipeline_mode<synchronous>, transform_indices = @transform_1, window_bounds = array<i64: 1, 128>}, {transform_indices = @transform_2, window_bounds = array<i64: 1, 128, 256>}, {transform_indices = @transform_3, window_bounds = array<i64: 1, 128, 128>}, {transform_indices = @transform_4, window_bounds = array<i64: 16, 128>}, {transform_indices = @transform_5, window_bounds = array<i64: 16, 128>}]} {
    %c0_i32 = arith.constant 0 : i32
    %0 = arith.cmpi eq, %arg1, %c0_i32 : i32
    %1 = arith.extui %0 : i1 to i32
    %c0_i32_0 = arith.constant 0 : i32
    %2 = arith.cmpi ne, %1, %c0_i32_0 : i32
    scf.if %2 {
      %c0_18 = arith.constant 0 : index
      %c0_19 = arith.constant 0 : index
      %26 = vector.load %arg2[%c0_18, %c0_19] : memref<16x128xf32, #tpu.memory_space<vmem>>, vector<16x128xf32>
      %27 = arith.mulf %26, %26 : vector<16x128xf32>
      %cst_20 = arith.constant dense<0.000000e+00> : vector<16xf32>
      %28 = vector.multi_reduction <add>, %27, %cst_20 [1] : vector<16x128xf32> to vector<16xf32>
      %29 = vector.shape_cast %28 : vector<16xf32> to vector<16x1xf32>
      %cst_21 = arith.constant 1.280000e+02 : f32
      %30 = vector.broadcast %cst_21 : f32 to vector<16x1xf32>
      %31 = arith.divf %29, %30 : vector<16x1xf32>
      %cst_22 = arith.constant 9.99999997E-7 : f32
      %32 = vector.broadcast %cst_22 : f32 to vector<16x1xf32>
      %33 = arith.addf %31, %32 : vector<16x1xf32>
      %34 = math.rsqrt %33 : vector<16x1xf32>
      %35 = vector.broadcast %34 : vector<16x1xf32> to vector<16x128xf32>
      %36 = arith.mulf %26, %35 : vector<16x128xf32>
      %c0_23 = arith.constant 0 : index
      %c0_24 = arith.constant 0 : index
      %37 = vector.load %arg3[%c0_23, %c0_24] : memref<1x128xf32, #tpu.memory_space<vmem>>, vector<1x128xf32>
      %38 = vector.broadcast %37 : vector<1x128xf32> to vector<16x128xf32>
      %39 = arith.mulf %36, %38 : vector<16x128xf32>
      %c0_25 = arith.constant 0 : index
      %c0_26 = arith.constant 0 : index
      %40 = vector.load %arg8[%c0_25, %c0_26] : memref<16x128xf32, #tpu.memory_space<vmem>>, vector<16x128xf32>
      tpu.vector_store %arg8[%c0_25, %c0_26], %39 {strides = array<i32>} : memref<16x128xf32, #tpu.memory_space<vmem>>, vector<16x128xf32>,
      %cst_27 = arith.constant 0.000000e+00 : f32
      %41 = vector.broadcast %cst_27 : f32 to vector<16x128xf32>
      %c0_28 = arith.constant 0 : index
      %c0_29 = arith.constant 0 : index
      %42 = vector.load %arg9[%c0_28, %c0_29] : memref<16x128xf32, #tpu.memory_space<vmem>>, vector<16x128xf32>
      tpu.vector_store %arg9[%c0_28, %c0_29], %41 {strides = array<i32>} : memref<16x128xf32, #tpu.memory_space<vmem>>, vector<16x128xf32>,
    } else {
    }
    %c0 = arith.constant 0 : index
    %c0_1 = arith.constant 0 : index
    %3 = vector.load %arg8[%c0, %c0_1] : memref<16x128xf32, #tpu.memory_space<vmem>>, vector<16x128xf32>
    %c0_2 = arith.constant 0 : index
    %c0_3 = arith.constant 0 : index
    %c0_4 = arith.constant 0 : index
    %4 = vector.load %arg4[%c0_2, %c0_3, %c0_4] : memref<1x128x256xf32, #tpu.memory_space<vmem>>, vector<1x128x128xf32>
    %5 = vector.shape_cast %4 : vector<1x128x128xf32> to vector<128x128xf32>
    %cst = arith.constant dense<0.000000e+00> : vector<16x128xf32>
    %6 = tpu.matmul %3, %5, %cst {dimension_numbers = #tpu.dot_dimension_numbers<[1], [0], [0], [1], [0, 0, 1, 1], [], []>} : vector<16x128xf32>, vector<128x128xf32>, vector<16x128xf32> -> vector<16x128xf32>
    %c0_5 = arith.constant 0 : index
    %c0_6 = arith.constant 0 : index
    %c128 = arith.constant 128 : index
    %7 = vector.load %arg4[%c0_5, %c0_6, %c128] : memref<1x128x256xf32, #tpu.memory_space<vmem>>, vector<1x128x128xf32>
    %8 = vector.shape_cast %7 : vector<1x128x128xf32> to vector<128x128xf32>
    %cst_7 = arith.constant dense<0.000000e+00> : vector<16x128xf32>
    %9 = tpu.matmul %3, %8, %cst_7 {dimension_numbers = #tpu.dot_dimension_numbers<[1], [0], [0], [1], [0, 0, 1, 1], [], []>} : vector<16x128xf32>, vector<128x128xf32>, vector<16x128xf32> -> vector<16x128xf32>
    %10 = arith.negf %6 : vector<16x128xf32>
    %11 = math.exp %10 : vector<16x128xf32>
    %cst_8 = arith.constant 1.000000e+00 : f32
    %12 = vector.broadcast %cst_8 : f32 to vector<16x128xf32>
    %13 = arith.addf %12, %11 : vector<16x128xf32>
    %14 = arith.divf %12, %13 : vector<16x128xf32>
    %15 = arith.mulf %6, %14 : vector<16x128xf32>
    %16 = arith.mulf %15, %9 : vector<16x128xf32>
    %c0_9 = arith.constant 0 : index
    %c0_10 = arith.constant 0 : index
    %17 = vector.load %arg9[%c0_9, %c0_10] : memref<16x128xf32, #tpu.memory_space<vmem>>, vector<16x128xf32>
    %c0_11 = arith.constant 0 : index
    %c0_12 = arith.constant 0 : index
    %c0_13 = arith.constant 0 : index
    %18 = vector.load %arg5[%c0_11, %c0_12, %c0_13] : memref<1x128x128xf32, #tpu.memory_space<vmem>>, vector<1x128x128xf32>
    %19 = vector.shape_cast %18 : vector<1x128x128xf32> to vector<128x128xf32>
    %cst_14 = arith.constant dense<0.000000e+00> : vector<16x128xf32>
    %20 = tpu.matmul %16, %19, %cst_14 {dimension_numbers = #tpu.dot_dimension_numbers<[1], [0], [0], [1], [0, 0, 1, 1], [], []>} : vector<16x128xf32>, vector<128x128xf32>, vector<16x128xf32> -> vector<16x128xf32>
    %21 = arith.addf %17, %20 : vector<16x128xf32>
    %c0_15 = arith.constant 0 : index
    %c0_16 = arith.constant 0 : index
    %22 = vector.load %arg9[%c0_15, %c0_16] : memref<16x128xf32, #tpu.memory_space<vmem>>, vector<16x128xf32>
    tpu.vector_store %arg9[%c0_15, %c0_16], %21 {strides = array<i32>} : memref<16x128xf32, #tpu.memory_space<vmem>>, vector<16x128xf32>,
    %c1_i32 = arith.constant 1 : i32
    %23 = arith.cmpi eq, %arg1, %c1_i32 : i32
    %24 = arith.extui %23 : i1 to i32
    %c0_i32_17 = arith.constant 0 : i32
    %25 = arith.cmpi ne, %24, %c0_i32_17 : i32
    scf.if %25 {
      %c0_18 = arith.constant 0 : index
      %c0_19 = arith.constant 0 : index
      %26 = vector.load %arg9[%c0_18, %c0_19] : memref<16x128xf32, #tpu.memory_space<vmem>>, vector<16x128xf32>
      %c0_20 = arith.constant 0 : index
      %c0_21 = arith.constant 0 : index
      %27 = vector.load %arg6[%c0_20, %c0_21] : memref<16x128xf32, #tpu.memory_space<vmem>>, vector<16x128xf32>
      %28 = arith.addf %26, %27 : vector<16x128xf32>
      %c0_22 = arith.constant 0 : index
      %c0_23 = arith.constant 0 : index
      %29 = vector.load %arg7[%c0_22, %c0_23] : memref<16x128xf32, #tpu.memory_space<vmem>>, vector<16x128xf32>
      tpu.vector_store %arg7[%c0_22, %c0_23], %28 {strides = array<i32>} : memref<16x128xf32, #tpu.memory_space<vmem>>, vector<16x128xf32>,
    } else {
    }
    return
  }
  func.func @transform_0(%arg0: i32, %arg1: i32) -> (i32, i32) {
    %c0_i32 = arith.constant 0 : i32
    %c0_i32_0 = arith.constant 0 : i32
    return %arg0, %c0_i32 : i32, i32
  }
  func.func @transform_1(%arg0: i32, %arg1: i32) -> (i32, i32) {
    %c0_i32 = arith.constant 0 : i32
    %c0_i32_0 = arith.constant 0 : i32
    %c0_i32_1 = arith.constant 0 : i32
    return %c0_i32, %c0_i32_0 : i32, i32
  }
  func.func @transform_2(%arg0: i32, %arg1: i32) -> (i32, i32, i32) {
    %c0_i32 = arith.constant 0 : i32
    %c0_i32_0 = arith.constant 0 : i32
    %c0_i32_1 = arith.constant 0 : i32
    return %arg1, %c0_i32, %c0_i32_0 : i32, i32, i32
  }
  func.func @transform_3(%arg0: i32, %arg1: i32) -> (i32, i32, i32) {
    %c0_i32 = arith.constant 0 : i32
    %c0_i32_0 = arith.constant 0 : i32
    %c0_i32_1 = arith.constant 0 : i32
    return %arg1, %c0_i32, %c0_i32_0 : i32, i32, i32
  }
  func.func @transform_4(%arg0: i32, %arg1: i32) -> (i32, i32) {
    %c0_i32 = arith.constant 0 : i32
    %c0_i32_0 = arith.constant 0 : i32
    return %arg0, %c0_i32 : i32, i32
  }
  func.func @transform_5(%arg0: i32, %arg1: i32) -> (i32, i32) {
    %c0_i32 = arith.constant 0 : i32
    %c0_i32_0 = arith.constant 0 : i32
    return %arg0, %c0_i32 : i32, i32
  }
}

</mosaic_0001>

<bundles_post_ra>
// kernel: tpu_custom_call.1
= control target key start
LH: loop header
LB: loop body
LE: loop exit
PB: predicated region body
PF: predicated region fallthrough
CT: control target
= control target key end

     0   :  { %s1379_s0 = inlined_call_operand.hbm [shape: f32[16,128], index: 0, kind: input, shape index: {}]   ;;  %s1380_s1 = inlined_call_operand.hbm [shape: f32[1,128], index: 1, kind: input, shape index: {}]   ;;  %s1381_s2 = inlined_call_operand.hbm [shape: f32[2,128,256], index: 2, kind: input, shape index: {}]   ;;  %s1382_s3 = inlined_call_operand.hbm [shape: f32[2,128,128], index: 3, kind: input, shape index: {}]   ;;  %s1383_s4 = inlined_call_operand.hbm [shape: f32[16,128], index: 4, kind: input, shape index: {}]   ;;  %s1384_s5 = inlined_call_operand.hbm [shape: f32[16,128], index: 5, kind: output, shape index: {}]  }
   0x1   :  { %1390 = sst [smem:[#allocation20_spill]] %s1379_s0 }
   0x2   :  { %1391 = sst [smem:[#allocation21_spill]] %s1380_s1 }
   0x3   :  { %1392 = sst [smem:[#allocation22_spill]] %s1381_s2 }
   0x4   :  { %1393 = sst [smem:[#allocation23_spill]] %s1383_s4 }
   0x5   :  { %10 = vsyncpa [#allocation5], 0 }
   0x6   :  { %11 = vsyncpa [#allocation8], 0 }
   0x7   :  { %12 = vsyncpa [#allocation6], 0  ;;  %s1167_s18 = smov 0   ;;  %s1169_s19 = smov 0  }
   0x8   :  { %s1171_s20 = smov 0   ;;  %s1173_s21 = smov 0  }
   0x9   :  { %s1175_s22 = smov 0   ;;  %s1177_s23 = smov 0  }
   0xa LB: > { %s1196_s24 = sadd.s32 4294967295, %s1123_s23   ;;  %p97_p0 = scmp.ne.s32.totalorder %s1107_s19, %s1103_s18  ;;  %s1123_s23 = sphi %s1177_s23, %s18_s23   ;;  %s1119_s22 = sphi %s1175_s22, %s1413_s22   ;;  %s1115_s21 = sphi %s1173_s21, %s1412_s21   ;;  %s1111_s20 = sphi %s1171_s20, %s1411_s20   ;;  %s1107_s19 = sphi %s1169_s19, %s1410_s19   ;;  %s1103_s18 = sphi %s1167_s18, %s1409_s18  }
   0xb   : > { %p98_p1 = scmp.eq.s32.totalorder %s1196_s24, 0  ;;  %p715_p2 = scmp.ge.s32.totalorder %s1123_s23, 1 }
   0xc   : > { %p186_p3 = scmp.lt.s32.totalorder %s1123_s23, 3  ;;  %s1395_s0 = sld [smem:[#allocation20_spill]] }
   0xd   : > { %p1204_p4 = por %p98_p1, %p97_p0  ;;  %s1125_s30 = smov [#allocation4]  }
   0xe   : > { %p1211_p5 = pnand %p715_p2, %p186_p3  ;;  %s202_s6 = sshll.u32 %s1125_s30, 4  ;;  %s203_s6 = int_to_ptr.vmem [resolvable:$true] %s202_s6 }
   0xf   : > { %s1398_s1 = sld [smem:[#allocation21_spill]]  ;;  %s1385_s11 = smov 128  }
  0x10   : > { %p778_p6 = pneg %p1211_p5  ;;  %s1387_s12 = smov 8  }
  0x11   : > { %s1128_s13 = smov [#allocation7]   ;;  %s27_s15 = sadd.s32 1, %s1119_s22 }
  0x12   : > { %s200_s28 = sshll.u32 %s1395_s0, 4  ;;  %p1219_p7 = pnand %p778_p6, %p98_p1  ;;  %s201_s28 = int_to_ptr.hbm [resolvable:$true] %s200_s28 }
  0x13   : > { %s217_s14 = sshll.u32 %s1128_s13, 4  ;;  %s84_s16 = sadd.s32 1, %s1111_s20  ;;  %s218_s14 = int_to_ptr.vmem [resolvable:$true] %s217_s14 }
  0x14   : > { %781 = dma.hbm_to_vmem [thread:$0]  (!%p1219_p7), %s201_s28, 256, %s203_s6, [#allocation5], %s1385_s11, %s1385_s11, %s1387_s12  }
  0x15   : > { %s215_s10 = sshll.u32 %s1398_s1, 4  ;;  %p28_p8 = scmp.ge.s32.totalorder %s27_s15, 2  ;;  %s216_s10 = int_to_ptr.hbm [resolvable:$true] %s215_s10 }
  0x16   : > { %784 = dma.hbm_to_vmem [thread:$0]  (!%p1219_p7), %s216_s10, 16, %s218_s14, [#allocation8]  }
  0x17   : > { %p91_p9 = scmp.ne.s32.totalorder %s1111_s20, %s1107_s19  ;;  %p92_p10 = scmp.eq.s32.totalorder %s1123_s23, 0 }
  0x18   : > { %p798_p11 = scmp.lt.s32.totalorder %s1123_s23, 2  ;;  %s1415_s15 = smov (%p28_p8, %s27_s15), 0 }
  0x19   : > { %1399 = sst [smem:[#allocation18_spill]] %s1415_s15  ;;  %p1241_p12 = por %p92_p10, %p91_p9 }
  0x1a   : > { %s245_s18 = sand.u32 1, %s1123_s23   ;;  %s81_s26 = ssub.s32 %s1119_s22, %s1415_s15 }
  0x1b   : > { %p82_p13 = scmp.eq.s32.totalorder %s81_s26, 0  ;;  %s247_s27 = sand.u32 1, %s1111_s20  }
  0x1c   : > { %s720_s28 = sshll.u32 %s247_s27, 8  ;;  %s740_s30 = sshll.u32 %s1119_s22, 8 }
  0x1d   : > { %s1251_s6 = scalar_select %p82_p13, %s1111_s20, %s84_s16  }
  0x1e   : > { %s1402_s2 = sld [smem:[#allocation22_spill]]  ;;  %s249_s14 = scalar_lea.vmem [#allocation9], %s720_s28 }
  0x1f   : > { %1401 = sst [smem:[#allocation19_spill]] %s1251_s6  ;;  %s257_s11 = sshll.u32 %s249_s14, 4  ;;  %s258_s11 = int_to_ptr.vmem [resolvable:$true] %s257_s11 }
  0x20   : > { %p1260_p0 = pnand %p798_p11, %p1241_p12  ;;  %s1404_s4 = sld [smem:[#allocation23_spill]] }
  0x21   : > { %s1129_s8 = smov 256   ;;  %s1130_s28 = smov 16  }
  0x22   : > { %s723_s9 = sshll.u32 %s247_s27, 7  ;;  %s741_s14 = sshll.u32 %s1119_s22, 7 }
  0x23   : > { %s1405_s1 = smov 8  }
  0x24   : > { %s254_s10 = scalar_lea.hbm %s1402_s2, %s740_s30  ;;  %s246_s30 = scalar_lea.sflag [#allocation5], %s245_s18 }
  0x25   : > { %s255_s13 = sshll.u32 %s254_s10, 4  ;;  %s1131_s10 = smov [#allocation11]   ;;  %s256_s13 = int_to_ptr.hbm [resolvable:$true] %s255_s13 }
  0x26   : > { %s229_s0 = sshll.u32 %s1404_s4, 4  ;;  %s231_s17 = sshll.u32 %s1131_s10, 4  ;;  %s230_s0 = int_to_ptr.hbm [resolvable:$true] %s229_s0  ;;  %s232_s17 = int_to_ptr.vmem [resolvable:$true] %s231_s17 }
  0x27   : > { %791 = dma.hbm_to_vmem [thread:$0]  (!%p1260_p0), %s256_s13, 4096, %s258_s11, %s246_s30, %s1129_s8, %s1129_s8, %s1130_s28  }
  0x28   : > { %s1406_s2 = smov 128   ;;  %s276_s4 = scalar_lea.hbm %s1382_s3, %s741_s14 }
  0x29   : > { %787 = dma.hbm_to_vmem [thread:$0]  (!%p1219_p7), %s230_s0, 256, %s232_s17, [#allocation8], %s1406_s2, %s1406_s2, %s1405_s1  }
  0x2a   : > { %s271_s18 = scalar_lea.vmem [#allocation10], %s723_s9  ;;  %s277_s6 = sshll.u32 %s276_s4, 4  ;;  %s278_s6 = int_to_ptr.hbm [resolvable:$true] %s277_s6 }
  0x2b   : > { %s279_s15 = sshll.u32 %s271_s18, 4  ;;  %291 = sbr.rel (%p1211_p5) target bundleno = 568 (0x238), region = 40  ;;  %s280_s15 = int_to_ptr.vmem [resolvable:$true] %s279_s15 }
  0x2c   : > { %794 = dma.hbm_to_vmem [thread:$0]  (!%p1260_p0), %s278_s6, 2048, %s280_s15, %s246_s30, %s1406_s2, %s1406_s2, %s1405_s1  }
  0x30   : > { %1082 = dma.done.wait (%p98_p1), [#allocation5], 256  }
  0x31   : > { %1084 = vsyncadd (%p98_p1), [#allocation5], 4294967040 }
  0x32   : > { %1086 = dma.done.wait (%p98_p1), [#allocation8], 16  }
  0x33   : > { %1088 = vsyncadd (%p98_p1), [#allocation8], 4294967280  ;;  %s303_s0 = sand.u32 1, %s1196_s24   ;;  %s305_s1 = sand.u32 1, %s1107_s19  }
  0x34   : > { %s729_s2 = sshll.u32 %s305_s1, 8  ;;  %s304_s4 = scalar_lea.sflag [#allocation5], %s303_s0 }
  0x35   : > { %s1295_s29 = scalar_lea.vmem [#allocation9], %s729_s2 }
  0x36   : > { %1090 = dma.done.wait (%p1204_p4), %s304_s4, 6144  }
  0x37   : > { %1092 = vsyncadd (%p1204_p4), %s304_s4, 4294961152  ;;  %s730_s7 = sshll.u32 %s305_s1, 7 }
  0x38   : > { %s1301_s11 = scalar_lea.vmem [#allocation10], %s730_s7 }
  0x39   : > { %1094 = dma.done.wait (%p98_p1), [#allocation8], 256  }
  0x3a   : > { %1096 = vsyncadd (%p98_p1), [#allocation8], 4294967040  ;;  %p732_p2 = scmp.ne.s32.totalorder %s1115_s21, 0 }
  0x3c   : > { %356 = sbr.rel (%p732_p2) target bundleno = 219 (0xdb), region = 64 }
  0x41   : > { %v357_v0 = vld [vmem:[#allocation4] sm:$0xff]  ;;  %v358_v2 = vld [vmem:[#allocation4 + $0x8] sm:$0xff]  ;;  %v1132_v4 = vmov 128.0   ;;  %v1133_v14 = vmov 0.0   ;;  %v864_v26 = vld [vmem:[#allocation7] ss:$0 sm:$0xff] }
  0x42   : > { %v359_v1 = vmul.f32 %v357_v0, %v357_v0  ;;  %v360_v3 = vmul.f32 %v358_v2, %v358_v2  ;;  %865 = vrcp.f32 %v1132_v4  ;;  %406 = vst [vmem:[#allocation3 + $0x8] sm:$0xff] %v1133_v14 }
  0x43   : > { %407 = vst [vmem:[#allocation3] sm:$0xff] %v1133_v14 }
  0x44   : > { %361 = vadd.xlane.f32.xlu0 %v359_v1 }
  0x48   : > { %v866_v5 = vpop.eup %865 }
  0x49   : > { %v366_v6 = vmul.f32 128.0, %v866_v5  ;;  %vm370_vm0 = vweird.f32 %v866_v5 }
  0x4b   : > { %v367_v7 = vsub.f32 1.0, %v366_v6 }
  0x4c   : > { %363 = vadd.xlane.f32.xlu0 %v360_v3 }
  0x4d   : > { %v368_v8 = vmul.f32 %v866_v5, %v367_v7 }
  0x4f   : > { %v369_v9 = vadd.f32 %v866_v5, %v368_v8 }
  0x51   : > { %v371_v10 = vsel %vm370_vm0, %v866_v5, %v369_v9 }
  0xb7   : > { %v362_v11 = vpop.xlane.xlu0 %361 }
  0xb8   : > { %v372_v12 = vmul.f32 %v371_v10, %v362_v11 }
  0xba   : > { %v374_v13 = vadd.f32 1e-06, %v372_v12 }
  0xbc   : > { %867 = vrsqrt.f32 %v374_v13  ;;  %vm382_vm2 = vweird.f32 %v374_v13 }
  0xbf   : > { %v364_v15 = vpop.xlane.xlu0 %363 }
  0xc0   : > { %v373_v16 = vmul.f32 %v371_v10, %v364_v15 }
  0xc2   : > { %v868_v17 = vpop.eup %867  ;;  %v375_v18 = vadd.f32 1e-06, %v373_v16 }
  0xc3   : > { %v377_v19 = vmul.f32 %v868_v17, %v374_v13  ;;  %vm383_vm1 = vweird.f32 %v868_v17 }
  0xc4   : > { %869 = vrsqrt.f32 %v375_v18  ;;  %vm384_vm3 = vmor %vm382_vm2, %vm383_vm1  ;;  %vm392_vm5 = vweird.f32 %v375_v18 }
  0xc5   : > { %v378_v20 = vmul.f32 %v868_v17, %v377_v19 }
  0xc7   : > { %v379_v21 = vmul.f32 0.5, %v378_v20 }
  0xc9   : > { %v380_v22 = vsub.f32 1.5, %v379_v21 }
  0xca   : > { %v870_v23 = vpop.eup %869 }
  0xcb   : > { %v381_v24 = vmul.f32 %v868_v17, %v380_v22  ;;  %v387_v25 = vmul.f32 %v870_v23, %v375_v18  ;;  %vm393_vm4 = vweird.f32 %v870_v23 }
  0xcc   : > { %vm394_vm6 = vmor %vm392_vm5, %vm393_vm4 }
  0xcd   : > { %v385_v27 = vsel %vm384_vm3, %v868_v17, %v381_v24  ;;  %v388_v28 = vmul.f32 %v870_v23, %v387_v25 }
  0xce   : > { %v396_v29 = vmul.f32 %v385_v27, %v357_v0 }
  0xcf   : > { %v389_v30 = vmul.f32 0.5, %v388_v28 }
  0xd0   : > { %v402_v31 = vmul.f32 %v864_v26, %v396_v29 }
  0xd1   : > { %v390_v32 = vsub.f32 1.5, %v389_v30 }
  0xd2   : > { %404 = vst [vmem:[#allocation2] sm:$0xff] %v402_v31 }
  0xd3   : > { %v391_v33 = vmul.f32 %v870_v23, %v390_v32 }
  0xd5   : > { %v395_v34 = vsel %vm394_vm6, %v870_v23, %v391_v33 }
  0xd6   : > { %v397_v35 = vmul.f32 %v395_v34, %v358_v2 }
  0xd8   : > { %v403_v36 = vmul.f32 %v864_v26, %v397_v35 }
  0xda   : > { %405 = vst [vmem:[#allocation2 + $0x8] sm:$0xff] %v403_v36 }
  0xdb PF: > { %v425_v37 = vld [vmem:[%s1295_s29 + $0xf0] sm:$0xff]  ;;  %v424_v38 = vld [vmem:[%s1295_s29 + $0xe0] sm:$0xff]  ;;  %v464_v41 = vld [vmem:[%s1295_s29 + $0xf8] sm:$0xff]  ;;  %p735_p1 = scmp.ne.s32.totalorder %s1115_s21, 1 }
  0xdc   : > { %426 = vmatpush.msra.mxu0 %v425_v37  ;;  %742 = vmatpush.msra.mxu3 %v425_v37  ;;  %v423_v39 = vld [vmem:[%s1295_s29 + $0xd0] sm:$0xff]  ;;  %v422_v40 = vld [vmem:[%s1295_s29 + $0xc0] sm:$0xff]  ;;  %v463_v42 = vld [vmem:[%s1295_s29 + $0xe8] sm:$0xff] }
  0xdd   : > { %v421_v43 = vld [vmem:[%s1295_s29 + $0xb0] sm:$0xff]  ;;  %465 = vmatpush.msra.mxu1 %v464_v41  ;;  %v462_v44 = vld [vmem:[%s1295_s29 + $0xd8] sm:$0xff]  ;;  %v420_v45 = vld [vmem:[%s1295_s29 + $0xa0] sm:$0xff] }
  0xde   : > { %427 = vmatpush.msra.mxu0 %v424_v38  ;;  %743 = vmatpush.msra.mxu3 %v424_v38  ;;  %v461_v46 = vld [vmem:[%s1295_s29 + $0xc8] sm:$0xff]  ;;  %v419_v47 = vld [vmem:[%s1295_s29 + $0x90] sm:$0xff]  ;;  %v460_v48 = vld [vmem:[%s1295_s29 + $0xb8] sm:$0xff] }
  0xdf   : > { %466 = vmatpush.msra.mxu1 %v463_v42  ;;  %v418_v49 = vld [vmem:[%s1295_s29 + $0x80] sm:$0xff]  ;;  %v459_v50 = vld [vmem:[%s1295_s29 + $0xa8] sm:$0xff]  ;;  %v417_v51 = vld [vmem:[%s1295_s29 + $0x70] sm:$0xff] }
  0xe0   : > { %428 = vmatpush.msra.mxu0 %v423_v39  ;;  %744 = vmatpush.msra.mxu3 %v423_v39  ;;  %v458_v52 = vld [vmem:[%s1295_s29 + $0x98] sm:$0xff]  ;;  %v416_v53 = vld [vmem:[%s1295_s29 + $0x60] sm:$0xff]  ;;  %v457_v54 = vld [vmem:[%s1295_s29 + $0x88] sm:$0xff] }
  0xe1   : > { %467 = vmatpush.msra.mxu1 %v462_v44  ;;  %v415_v55 = vld [vmem:[%s1295_s29 + $0x50] sm:$0xff]  ;;  %v456_v56 = vld [vmem:[%s1295_s29 + $0x78] sm:$0xff]  ;;  %v414_v57 = vld [vmem:[%s1295_s29 + $0x40] sm:$0xff] }
  0xe2   : > { %429 = vmatpush.msra.mxu0 %v422_v40  ;;  %745 = vmatpush.msra.mxu3 %v422_v40  ;;  %v455_v58 = vld [vmem:[%s1295_s29 + $0x68] sm:$0xff]  ;;  %v413_v59 = vld [vmem:[%s1295_s29 + $0x30] sm:$0xff]  ;;  %v454_v60 = vld [vmem:[%s1295_s29 + $0x58] sm:$0xff] }
  0xe3   : > { %468 = vmatpush.msra.mxu1 %v461_v46  ;;  %v412_v61 = vld [vmem:[%s1295_s29 + $0x20] sm:$0xff]  ;;  %v453_v62 = vld [vmem:[%s1295_s29 + $0x48] sm:$0xff]  ;;  %v411_v63 = vld [vmem:[%s1295_s29 + $0x10] sm:$0xff] }
  0xe4   : > { %430 = vmatpush.msra.mxu0 %v421_v43  ;;  %746 = vmatpush.msra.mxu3 %v421_v43  ;;  %v452_v0 = vld [vmem:[%s1295_s29 + $0x38] sm:$0xff]  ;;  %v410_v1 = vld [vmem:[%s1295_s29] sm:$0xff]  ;;  %v408_v2 = vld [vmem:[#allocation2] sm:$0xff] }
  0xe5   : > { %469 = vmatpush.msra.mxu1 %v460_v48  ;;  %v409_v3 = vld [vmem:[#allocation2 + $0x8] sm:$0xff]  ;;  %v451_v4 = vld [vmem:[%s1295_s29 + $0x28] sm:$0xff]  ;;  %v544_v10 = vld [vmem:[%s1301_s11 + $0x60] sm:$0xff] }
  0xe6   : > { %431 = vmatpush.msra.mxu0 %v420_v45  ;;  %747 = vmatpush.msra.mxu3 %v420_v45  ;;  %v450_v5 = vld [vmem:[%s1295_s29 + $0x18] sm:$0xff]  ;;  %v449_v6 = vld [vmem:[%s1295_s29 + $0x8] sm:$0xff]  ;;  %v546_v8 = vld [vmem:[%s1301_s11 + $0x70] sm:$0xff] }
  0xe7   : > { %470 = vmatpush.msra.mxu1 %v459_v50  ;;  %v547_v7 = vld [vmem:[%s1301_s11 + $0x78] sm:$0xff]  ;;  %v545_v9 = vld [vmem:[%s1301_s11 + $0x68] sm:$0xff]  ;;  %v542_v12 = vld [vmem:[%s1301_s11 + $0x50] sm:$0xff] }
  0xe8   : > { %432 = vmatpush.msra.mxu0 %v419_v47  ;;  %748 = vmatpush.msra.mxu3 %v419_v47  ;;  %v543_v11 = vld [vmem:[%s1301_s11 + $0x58] sm:$0xff]  ;;  %v541_v13 = vld [vmem:[%s1301_s11 + $0x48] sm:$0xff]  ;;  %v540_v14 = vld [vmem:[%s1301_s11 + $0x40] sm:$0xff] }
  0xe9   : > { %471 = vmatpush.msra.mxu1 %v458_v52  ;;  %548 = vmatpush.msra.mxu2 %v547_v7  ;;  %v539_v15 = vld [vmem:[%s1301_s11 + $0x38] sm:$0xff]  ;;  %v538_v16 = vld [vmem:[%s1301_s11 + $0x30] sm:$0xff]  ;;  %v537_v17 = vld [vmem:[%s1301_s11 + $0x28] sm:$0xff] }
  0xea   : > { %433 = vmatpush.msra.mxu0 %v418_v49  ;;  %749 = vmatpush.msra.mxu3 %v418_v49  ;;  %v536_v18 = vld [vmem:[%s1301_s11 + $0x20] sm:$0xff]  ;;  %v535_v19 = vld [vmem:[%s1301_s11 + $0x18] sm:$0xff]  ;;  %v534_v20 = vld [vmem:[%s1301_s11 + $0x10] sm:$0xff] }
  0xeb   : > { %472 = vmatpush.msra.mxu1 %v457_v54  ;;  %549 = vmatpush.msra.mxu2 %v546_v8  ;;  %v533_v21 = vld [vmem:[%s1301_s11 + $0x8] sm:$0xff]  ;;  %v532_v22 = vld [vmem:[%s1301_s11] sm:$0xff] }
  0xec   : > { %434 = vmatpush.msra.mxu0 %v417_v51  ;;  %750 = vmatpush.msra.mxu3 %v417_v51 }
  0xed   : > { %473 = vmatpush.msra.mxu1 %v456_v56  ;;  %550 = vmatpush.msra.mxu2 %v545_v9 }
  0xee   : > { %435 = vmatpush.msra.mxu0 %v416_v53  ;;  %751 = vmatpush.msra.mxu3 %v416_v53 }
  0xef   : > { %474 = vmatpush.msra.mxu1 %v455_v58  ;;  %551 = vmatpush.msra.mxu2 %v544_v10 }
  0xf0   : > { %436 = vmatpush.msra.mxu0 %v415_v55  ;;  %752 = vmatpush.msra.mxu3 %v415_v55 }
  0xf1   : > { %475 = vmatpush.msra.mxu1 %v454_v60  ;;  %552 = vmatpush.msra.mxu2 %v543_v11  ;;  %v531_v60 = vld [vmem:[#allocation3] sm:$0xff] }
  0xf2   : > { %437 = vmatpush.msra.mxu0 %v414_v57  ;;  %753 = vmatpush.msra.mxu3 %v414_v57  ;;  %v530_v57 = vld [vmem:[#allocation3 + $0x8] sm:$0xff] }
  0xf3   : > { %476 = vmatpush.msra.mxu1 %v453_v62  ;;  %553 = vmatpush.msra.mxu2 %v542_v12 }
  0xf4   : > { %438 = vmatpush.msra.mxu0 %v413_v59  ;;  %754 = vmatpush.msra.mxu3 %v413_v59 }
  0xf5   : > { %477 = vmatpush.msra.mxu1 %v452_v0  ;;  %554 = vmatpush.msra.mxu2 %v541_v13 }
  0xf6   : > { %439 = vmatpush.msra.mxu0 %v412_v61  ;;  %755 = vmatpush.msra.mxu3 %v412_v61 }
  0xf7   : > { %478 = vmatpush.msra.mxu1 %v451_v4  ;;  %555 = vmatpush.msra.mxu2 %v540_v14 }
  0xf8   : > { %440 = vmatpush.msra.mxu0 %v411_v63  ;;  %756 = vmatpush.msra.mxu3 %v411_v63 }
  0xf9   : > { %479 = vmatpush.msra.mxu1 %v450_v5  ;;  %556 = vmatpush.msra.mxu2 %v539_v15 }
  0xfa   : > { %441 = vmatpush.msra.mxu0 %v410_v1  ;;  %757 = vmatpush.msra.mxu3 %v410_v1 }
  0xfb   : > { %442 = vmatmul.f32.vlgmr.msra.gmra.mxu0 %v408_v2  ;;  %445 = vmatmul.f32.vlgmr.msra.gmra.mxu3 %v409_v3 }
  0xfc   : > { %480 = vmatpush.msra.mxu1 %v449_v6  ;;  %557 = vmatpush.msra.mxu2 %v538_v16 }
  0xfd   : > { %481 = vmatmul.f32.vlgmr.msra.gmra.mxu1 %v408_v2 }
  0xfe   : > { %558 = vmatpush.msra.mxu2 %v537_v17 }
 0x100   : > { %559 = vmatpush.msra.mxu2 %v536_v18 }
 0x102   : > { %560 = vmatpush.msra.mxu2 %v535_v19 }
 0x104   : > { %561 = vmatpush.msra.mxu2 %v534_v20 }
 0x105   : > { %484 = vmatmul.f32.gmra.mxu1 %v409_v3 }
 0x106   : > { %562 = vmatpush.msra.mxu2 %v533_v21 }
 0x108   : > { %563 = vmatpush.msra.mxu2 %v532_v22 }
 0x178   : > { %v443_v23 = vpop.f32.mrf.mxu0 }
 0x179   : > { %v733_v24 = vmul.f32 -1.442695, %v443_v23 }
 0x17a   : > { %v482_v41 = vpop.f32.mrf.mxu1 }
 0x17b   : > { %871 = vpow2.f32 %v733_v24 }
 0x17e   : > { %v446_v25 = vpop.f32.mrf.mxu3 }
 0x17f   : > { %v734_v26 = vmul.f32 -1.442695, %v446_v25 }
 0x181   : > { %v872_v27 = vpop.eup %871  ;;  %873 = vpow2.f32 %v734_v26 }
 0x182   : > { %v494_v28 = vadd.f32 1.0, %v872_v27  ;;  %v485_v55 = vpop.f32.mrf.mxu1 }
 0x184   : > { %875 = vrcp.f32 %v494_v28  ;;  %v507_v34 = vand.u32 2147483648, %v494_v28  ;;  %v505_v36 = vand.u32 2147483647, %v494_v28  ;;  %vm501_vm8 = vweird.f32 %v494_v28 }
 0x186   : > { %v508_v40 = vor.u32 1.1754944e-38, %v507_v34  ;;  %vm506_vm10 = vcmp.eq.f32.partialorder %v505_v36, 8.507059e+37 }
 0x187   : > { %v874_v29 = vpop.eup %873 }
 0x188   : > { %v495_v30 = vadd.f32 1.0, %v874_v29 }
 0x18a   : > { %v876_v31 = vpop.eup %875  ;;  %877 = vrcp.f32 %v495_v30  ;;  %v522_v45 = vand.u32 2147483648, %v495_v30  ;;  %v520_v48 = vand.u32 2147483647, %v495_v30  ;;  %vm516_vm12 = vweird.f32 %v495_v30 }
 0x18b   : > { %v497_v32 = vmul.f32 %v876_v31, %v494_v28  ;;  %vm502_vm7 = vweird.f32 %v876_v31 }
 0x18c   : > { %vm503_vm9 = vmor %vm501_vm8, %vm502_vm7  ;;  %v523_v51 = vor.u32 1.1754944e-38, %v522_v45  ;;  %vm521_vm14 = vcmp.eq.f32.partialorder %v520_v48, 8.507059e+37 }
 0x18d   : > { %v498_v33 = vsub.f32 1.0, %v497_v32 }
 0x18f   : > { %v499_v35 = vmul.f32 %v876_v31, %v498_v33 }
 0x190   : > { %v878_v37 = vpop.eup %877 }
 0x191   : > { %v500_v38 = vadd.f32 %v876_v31, %v499_v35  ;;  %v512_v39 = vmul.f32 %v878_v37, %v495_v30  ;;  %vm517_vm11 = vweird.f32 %v878_v37 }
 0x192   : > { %vm518_vm13 = vmor %vm516_vm12, %vm517_vm11 }
 0x193   : > { %v504_v42 = vsel %vm503_vm9, %v876_v31, %v500_v38  ;;  %v513_v43 = vsub.f32 1.0, %v512_v39 }
 0x194   : > { %v509_v44 = vsel %vm506_vm10, %v508_v40, %v504_v42 }
 0x195   : > { %v526_v46 = vmul.f32 %v509_v44, %v443_v23  ;;  %v514_v47 = vmul.f32 %v878_v37, %v513_v43 }
 0x197   : > { %v515_v49 = vadd.f32 %v878_v37, %v514_v47  ;;  %v528_v50 = vmul.f32 %v526_v46, %v482_v41 }
 0x199   : > { %v519_v52 = vsel %vm518_vm13, %v878_v37, %v515_v49  ;;  %564 = vmatmul.f32.vlgmr.msra.gmra.mxu2 %v528_v50 }
 0x19a   : > { %v524_v53 = vsel %vm521_vm14, %v523_v51, %v519_v52 }
 0x19b   : > { %v527_v54 = vmul.f32 %v524_v53, %v446_v25 }
 0x19d   : > { %v529_v56 = vmul.f32 %v527_v54, %v485_v55 }
 0x1a1   : > { %567 = vmatmul.f32.gmra.mxu2 %v529_v56 }
 0x21c   : > { %v565_v58 = vpop.f32.mrf.mxu2 }
 0x21d   : > { %v571_v59 = vadd.f32 %v565_v58, %v530_v57 }
 0x21f   : > { %573 = vst [vmem:[#allocation3 + $0x8] sm:$0xff] %v571_v59 }
 0x223   : > { %578 = sbr.rel (%p735_p1) target bundleno = 562 (0x232), region = 68 }
 0x224   : > { %v568_v61 = vpop.f32.mrf.mxu2 }
 0x225   : > { %v572_v62 = vadd.f32 %v568_v61, %v531_v60 }
 0x227   : > { %574 = vst [vmem:[#allocation3] sm:$0xff] %v572_v62 }
 0x228   : > { %v579_v63 = vld [vmem:[#allocation3 + $0x8] sm:$0xff] }
 0x229   : > { %v581_v0 = vld [vmem:[#allocation11] sm:$0xff]  ;;  %v582_v3 = vld [vmem:[#allocation11 + $0x8] sm:$0xff] }
 0x22a   : > { %v583_v2 = vadd.f32 %v581_v0, %v579_v63 }
 0x22c   : > { %585 = vst [vmem:[#allocation12] sm:$0xff] %v583_v2 }
 0x22e   : > { %v580_v1 = vld [vmem:[#allocation3] sm:$0xff] }
 0x22f   : > { %v584_v4 = vadd.f32 %v582_v3, %v580_v1 }
 0x231   : > { %586 = vst [vmem:[#allocation12 + $0x8] sm:$0xff] %v584_v4 }
 0x232 PF: > { %p802_p3 = scmp.eq.s32.totalorder %s1196_s24, 1  ;;  %s597_s27 = sshll.u32 %s1384_s5, 4  ;;  %s598_s27 = int_to_ptr.hbm [resolvable:$true] %s597_s27 }
 0x233   : > { %s1134_s6 = smov [#allocation12]   ;;  %s1135_s21 = smov 128  }
 0x234   : > { %s595_s13 = sshll.u32 %s1134_s6, 4  ;;  %s1136_s26 = smov 8   ;;  %s596_s13 = int_to_ptr.vmem [resolvable:$true] %s595_s13 }
 0x235   : > { %775 = dma.vmem_to_hbm [thread:$0]  (%p802_p3), %s596_s13, 256, %s598_s27, [#allocation6], %s1135_s21, %s1135_s21, %s1136_s26  }
 0x236   : > { %1098 = dma.done.wait (%p802_p3), [#allocation6], 256  }
 0x237   : > { %1100 = vsyncadd (%p802_p3), [#allocation6], 4294967040 }
 0x238 PF: > { %s18_s23 = sadd.s32 1, %s1123_s23   ;;  %s1407_s24 = sld [smem:[#allocation19_spill]] }
 0x239   : > { %p15_p4 = scmp.ge.s32.totalorder %s18_s23, 4   ;;  %s1408_s30 = sld [smem:[#allocation18_spill]] }
 0x23a   : > { %s1409_s18 = smov %s1107_s19  ;;  %s1410_s19 = smov %s1111_s20 }
 0x23b   : > { %s1412_s21 = smov %s1119_s22  ;;  %17 = sbr.rel (!%p15_p4) target bundleno = 10 (0xa), region = 110 }
 0x23e   : > { %s1411_s20 = smov %s1407_s24 }
 0x23f   : > { %s1413_s22 = smov %s1408_s30 }
 0x240   :  { %614 = vsyncpa [#allocation5], 1 }
 0x241   :  { %616 = vsyncpa [#allocation5 + $0x1], 1 }
 0x242   :  { %617 = vsyncpa [#allocation8], 1 }
 0x243   :  { %618 = vsyncpa [#allocation6], 1 }
 0x244   :  { %620 = vsyncpa [#allocation6 + $0x1], 1 }

</bundles_post_ra>
